<compile_context>
chip_gen: v7x
topology: tpu7x:2x2x1
jax: 0.10.0
libtpu: 0.0.40
codegen_flags: <defaults>
</compile_context>

<pallas_src>
import jax
import jax.numpy as jnp
from jax.experimental import pallas as pl
from jax.experimental.pallas import tpu as pltpu

FEAT_C = 64  # channel width of the feature maps fed into XNet's `final` conv


# ----------------------------------------------------------------------------
# Fused Pallas kernel: backbone projections + (x * mask) + final 1x1 conv
# ----------------------------------------------------------------------------
def _xnet_head_kernel(x_ref, m_ref, wu_ref, bu_ref, ws_ref, bs_ref,
                      wf_ref, bf_ref, o_ref):
    """One (C, tm) column tile of pixels.

    x_ref : (1, tm)    image pixels (img_c == 1), producer dtype (f32 here)
    m_ref : (cm, tm)   mask pixels, producer dtype (f32 here)
    wu    : (64, 1)  f32,  bu: (64, 1) f32
    ws    : (64, cm) bf16, bs: (64, 1) f32
    wf    : (nc, 64) bf16, bf: (nc, 1) f32
    o_ref : (nc, tm)   out dtype (bf16 by default)
    """
    # Image branch: cin == 1 -> rank-1 broadcast-multiply; stays on the VPU in
    # f32 (v5e has no bf16 VALU) and hides under the real matmuls.
    x = x_ref[...].astype(jnp.float32)                               # (1, tm)
    x_feat = jnp.maximum(wu_ref[...] * x + bu_ref[...], 0.0)         # (64, tm)

    # Mask branch: (64, cm) @ (cm, tm) on the MXU.  bf16 operands, f32 accum.
    m = m_ref[...].astype(ws_ref.dtype)                              # (cm, tm) bf16
    m_feat = jnp.maximum(
        jnp.dot(ws_ref[...], m, preferred_element_type=jnp.float32)
        + bs_ref[...], 0.0)                                          # (64, tm)

    # XNet head: final(x * mask).  Product in f32 on the VPU, then cast to
    # bf16 so the final dot also gets native-bf16 MXU operands.
    prod = (x_feat * m_feat).astype(wf_ref.dtype)                    # (64, tm) bf16
    out = (jnp.dot(wf_ref[...], prod, preferred_element_type=jnp.float32)
           + bf_ref[...])                                            # (nc, tm)
    o_ref[...] = out.astype(o_ref.dtype)


# ----------------------------------------------------------------------------
# Tile sizing helpers (generation-aware VMEM budget)
# ----------------------------------------------------------------------------
def _vmem_budget_bytes():
    """Roughly half of physical VMEM (v5e/v6e: 128 MiB, v7x: 64 MiB)."""
    try:
        physical = int(pltpu.get_tpu_info().vmem_capacity_bytes)
    except Exception:
        physical = 64 * 1024 * 1024  # v7x worst case
    return max(32 * 1024 * 1024, min(64 * 1024 * 1024, physical // 2))


def _max_tm_for_budget(budget_bytes, cm, nc, in_bytes, out_bytes, cap=16384):
    """Largest column-tile width whose per-step footprint fits the budget."""
    # double-buffered I/O tiles + (generous) f32 intermediates per column
    per_col = 2 * ((1 + cm) * in_bytes + nc * out_bytes) + 4 * FEAT_C * 4
    fit = int(0.75 * budget_bytes) // per_col
    return max(128, min(cap, (fit // 128) * 128))


def _pick_tm(hw, n, max_tm):
    """Column tile: as large as the VMEM budget allows; keep >= 2 total grid
    steps when cheap so both v7x TensorCores get work (costs ~nothing on
    v5e/v6e)."""
    max_tm = max(128, (max_tm // 128) * 128)
    if hw <= max_tm:
        if n >= 2 or hw < 256:
            return hw                       # whole image row in one tile
        # single image, single tile -> split in two lane-aligned tiles
        half = pl.cdiv(hw, 2)
        return min(hw, pl.cdiv(half, 128) * 128)
    # hw > max_tm: prefer a 128-multiple that divides hw (no ragged tail)
    for cand in range(max_tm, 127, -128):
        if hw % cand == 0:
            return cand
    return max_tm                           # ragged tail handled by edge blocks


# ----------------------------------------------------------------------------
# Wrapper
# ----------------------------------------------------------------------------
def xnet_forward(params, x_nchw, mask_nchw, *, tm=None,
                 out_dtype=jnp.bfloat16):
    n, ci, h, w = x_nchw.shape
    _, cm, _, _ = mask_nchw.shape
    assert ci == 1, "image branch is specialised for img_c == 1"
    hw = h * w
    num_classes = params["final_w"].shape[0]

    in_bytes = jnp.dtype(x_nchw.dtype).itemsize
    out_bytes = jnp.dtype(out_dtype).itemsize
    vmem_budget = _vmem_budget_bytes()
    if tm is None:
        tm = _pick_tm(hw, n,
                      _max_tm_for_budget(vmem_budget, cm, num_classes,
                                         in_bytes, out_bytes))

    # NCHW -> (N, C, H*W) is a pure reshape: no transpose, no dtype cast, no
    # padding -> no extra HBM passes in the wrapper.
    x = x_nchw.reshape(n, ci, hw)
    m = mask_nchw.reshape(n, cm, hw)

    # Weights for the MXU in bf16 (tiny arrays, cast once); biases stay f32.
    ws = params["small_w"].astype(jnp.bfloat16)
    wf = params["final_w"].astype(jnp.bfloat16)

    grid = (n, pl.cdiv(hw, tm))

    out = pl.pallas_call(
        _xnet_head_kernel,
        out_shape=jax.ShapeDtypeStruct((n, num_classes, hw), out_dtype),
        grid_spec=pltpu.PrefetchScalarGridSpec(
            num_scalar_prefetch=0,
            grid=grid,
            in_specs=[
                # activations: one (C, tm) column tile per step
                pl.BlockSpec((None, 1, tm), lambda b, i: (b, 0, i)),
                pl.BlockSpec((None, cm, tm), lambda b, i: (b, 0, i)),
                # weights / biases: tiny, constant block index -> stay resident
                pl.BlockSpec((FEAT_C, 1), lambda b, i: (0, 0)),
                pl.BlockSpec((FEAT_C, 1), lambda b, i: (0, 0)),
                pl.BlockSpec((FEAT_C, cm), lambda b, i: (0, 0)),
                pl.BlockSpec((FEAT_C, 1), lambda b, i: (0, 0)),
                pl.BlockSpec((num_classes, FEAT_C), lambda b, i: (0, 0)),
                pl.BlockSpec((num_classes, 1), lambda b, i: (0, 0)),
            ],
            out_specs=pl.BlockSpec((None, num_classes, tm),
                                   lambda b, i: (b, 0, i)),
        ),
        compiler_params=pltpu.CompilerParams(
            dimension_semantics=("parallel", "parallel"),
            vmem_limit_bytes=vmem_budget),
    )(x, m,
      params["unet_w"], params["unet_b"],
      ws, params["small_b"],
      wf, params["final_b"])

    return out.reshape(n, num_classes, h, w)


# ----------------------------------------------------------------------------
# Parameters (weights stored channels-first: (Cout, Cin), biases (Cout, 1))
# ----------------------------------------------------------------------------
def init_xnet_params(key, img_c=1, mask_c=14, num_classes=14):
    k1, k2, k3 = jax.random.split(key, 3)
    scale = 0.05
    return {
        "unet_w": scale * jax.random.normal(k1, (FEAT_C, img_c), jnp.float32),
        "unet_b": jnp.zeros((FEAT_C, 1), jnp.float32),
        "small_w": scale * jax.random.normal(k2, (FEAT_C, mask_c), jnp.float32),
        "small_b": jnp.zeros((FEAT_C, 1), jnp.float32),
        "final_w": scale * jax.random.normal(k3, (num_classes, FEAT_C),
                                             jnp.float32),
        "final_b": jnp.zeros((num_classes, 1), jnp.float32),
    }


# ----------------------------------------------------------------------------
# Pure-JAX f32 reference
# ----------------------------------------------------------------------------
def xnet_forward_ref(params, x_nchw, mask_nchw):
    n, ci, h, w = x_nchw.shape
    cm = mask_nchw.shape[1]
    nc = params["final_w"].shape[0]
    xr = x_nchw.reshape(n, ci, h * w).astype(jnp.float32)
    mr = mask_nchw.reshape(n, cm, h * w).astype(jnp.float32)
    xf = jnp.maximum(
        jnp.einsum("oi,nip->nop", params["unet_w"], xr)
        + params["unet_b"][None], 0.0)
    mf = jnp.maximum(
        jnp.einsum("oi,nip->nop", params["small_w"], mr)
        + params["small_b"][None], 0.0)
    out = (jnp.einsum("oi,nip->nop", params["final_w"], xf * mf)
           + params["final_b"][None])
    return out.reshape(n, nc, h, w)


# ----------------------------------------------------------------------------
if __name__ == "__main__":
    img_c, mask_c, num_classes = 1, 14, 14
    n, h, w = 2, 16, 16

    key = jax.random.PRNGKey(0)
    k_params, k_x, k_m = jax.random.split(key, 3)

    params = init_xnet_params(k_params, img_c, mask_c, num_classes)
    x = jax.random.normal(k_x, (n, img_c, h, w), jnp.float32)
    mask = jax.random.normal(k_m, (n, mask_c, h, w), jnp.float32)

    fwd = jax.jit(xnet_forward)
    out = fwd(params, x, mask)
    jax.block_until_ready(out)
    assert out.shape == (n, num_classes, h, w), out.shape

    # bf16 output + bf16 MXU operands vs. f32 reference: ~0.4% relative error,
    # comfortably within the tolerance below.
    ref = xnet_forward_ref(params, x, mask)
    assert jnp.allclose(out.astype(jnp.float32), ref, atol=1e-2, rtol=1e-2), (
        float(jnp.max(jnp.abs(out.astype(jnp.float32) - ref))))

    print("KERNEL_OK")
</pallas_src>

<mosaic_0001>
module attributes {stable_mosaic.version = 11 : i64} {
  func.func @_xnet_head_kernel(%arg0: i32, %arg1: i32, %arg2: memref<1x1x256xf32, #tpu.memory_space<vmem>>, %arg3: memref<1x14x256xf32, #tpu.memory_space<vmem>>, %arg4: memref<64x1xf32, #tpu.memory_space<vmem>>, %arg5: memref<64x1xf32, #tpu.memory_space<vmem>>, %arg6: memref<64x14xbf16, #tpu.memory_space<vmem>>, %arg7: memref<64x1xf32, #tpu.memory_space<vmem>>, %arg8: memref<14x64xbf16, #tpu.memory_space<vmem>>, %arg9: memref<14x1xf32, #tpu.memory_space<vmem>>, %arg10: memref<1x14x256xbf16, #tpu.memory_space<vmem>>) attributes {dimension_semantics = [#tpu.dimension_semantics<parallel>, #tpu.dimension_semantics<parallel>], iteration_bounds = array<i64: 2, 1>, scalar_prefetch = 0 : i64, scratch_operands = 0 : i64, tpu.core_type = #tpu.core_type<tc>, window_params = [{transform_indices = @transform_0, window_bounds = array<i64: 1, 1, 256>}, {transform_indices = @transform_1, window_bounds = array<i64: 1, 14, 256>}, {pipeline_mode = #tpu.pipeline_mode<synchronous>, transform_indices = @transform_2, window_bounds = array<i64: 64, 1>}, {pipeline_mode = #tpu.pipeline_mode<synchronous>, transform_indices = @transform_3, window_bounds = array<i64: 64, 1>}, {pipeline_mode = #tpu.pipeline_mode<synchronous>, transform_indices = @transform_4, window_bounds = array<i64: 64, 14>}, {pipeline_mode = #tpu.pipeline_mode<synchronous>, transform_indices = @transform_5, window_bounds = array<i64: 64, 1>}, {pipeline_mode = #tpu.pipeline_mode<synchronous>, transform_indices = @transform_6, window_bounds = array<i64: 14, 64>}, {pipeline_mode = #tpu.pipeline_mode<synchronous>, transform_indices = @transform_7, window_bounds = array<i64: 14, 1>}, {transform_indices = @transform_8, window_bounds = array<i64: 1, 14, 256>}]} {
    %c0 = arith.constant 0 : index
    %c0_0 = arith.constant 0 : index
    %c0_1 = arith.constant 0 : index
    %0 = vector.load %arg2[%c0, %c0_0, %c0_1] : memref<1x1x256xf32, #tpu.memory_space<vmem>>, vector<1x1x256xf32>
    %1 = vector.shape_cast %0 : vector<1x1x256xf32> to vector<1x256xf32>
    %c0_2 = arith.constant 0 : index
    %c0_3 = arith.constant 0 : index
    %2 = vector.load %arg4[%c0_2, %c0_3] : memref<64x1xf32, #tpu.memory_space<vmem>>, vector<64x1xf32>
    %3 = vector.broadcast %2 : vector<64x1xf32> to vector<64x256xf32>
    %4 = vector.broadcast %1 : vector<1x256xf32> to vector<64x256xf32>
    %5 = arith.mulf %3, %4 : vector<64x256xf32>
    %c0_4 = arith.constant 0 : index
    %c0_5 = arith.constant 0 : index
    %6 = vector.load %arg5[%c0_4, %c0_5] : memref<64x1xf32, #tpu.memory_space<vmem>>, vector<64x1xf32>
    %7 = vector.broadcast %6 : vector<64x1xf32> to vector<64x256xf32>
    %8 = arith.addf %5, %7 : vector<64x256xf32>
    %cst = arith.constant 0.000000e+00 : f32
    %9 = vector.broadcast %cst : f32 to vector<64x256xf32>
    %10 = arith.maximumf %8, %9 : vector<64x256xf32>
    %c0_6 = arith.constant 0 : index
    %c0_7 = arith.constant 0 : index
    %c0_8 = arith.constant 0 : index
    %11 = vector.load %arg3[%c0_6, %c0_7, %c0_8] : memref<1x14x256xf32, #tpu.memory_space<vmem>>, vector<1x14x256xf32>
    %12 = vector.shape_cast %11 : vector<1x14x256xf32> to vector<14x256xf32>
    %13 = arith.truncf %12 : vector<14x256xf32> to vector<14x256xbf16>
    %c0_9 = arith.constant 0 : index
    %c0_10 = arith.constant 0 : index
    %14 = vector.load %arg6[%c0_9, %c0_10] : memref<64x14xbf16, #tpu.memory_space<vmem>>, vector<64x14xbf16>
    %cst_11 = arith.constant dense<0.000000e+00> : vector<64x256xf32>
    %15 = tpu.matmul %14, %13, %cst_11 {dimension_numbers = #tpu.dot_dimension_numbers<[1], [0], [0], [1], [0, 0, 1, 1], [], []>} : vector<64x14xbf16>, vector<14x256xbf16>, vector<64x256xf32> -> vector<64x256xf32>
    %c0_12 = arith.constant 0 : index
    %c0_13 = arith.constant 0 : index
    %16 = vector.load %arg7[%c0_12, %c0_13] : memref<64x1xf32, #tpu.memory_space<vmem>>, vector<64x1xf32>
    %17 = vector.broadcast %16 : vector<64x1xf32> to vector<64x256xf32>
    %18 = arith.addf %15, %17 : vector<64x256xf32>
    %cst_14 = arith.constant 0.000000e+00 : f32
    %19 = vector.broadcast %cst_14 : f32 to vector<64x256xf32>
    %20 = arith.maximumf %18, %19 : vector<64x256xf32>
    %21 = arith.mulf %10, %20 : vector<64x256xf32>
    %22 = arith.truncf %21 : vector<64x256xf32> to vector<64x256xbf16>
    %c0_15 = arith.constant 0 : index
    %c0_16 = arith.constant 0 : index
    %23 = vector.load %arg8[%c0_15, %c0_16] : memref<14x64xbf16, #tpu.memory_space<vmem>>, vector<14x64xbf16>
    %cst_17 = arith.constant dense<0.000000e+00> : vector<14x256xf32>
    %24 = tpu.matmul %23, %22, %cst_17 {dimension_numbers = #tpu.dot_dimension_numbers<[1], [0], [0], [1], [0, 0, 1, 1], [], []>} : vector<14x64xbf16>, vector<64x256xbf16>, vector<14x256xf32> -> vector<14x256xf32>
    %c0_18 = arith.constant 0 : index
    %c0_19 = arith.constant 0 : index
    %25 = vector.load %arg9[%c0_18, %c0_19] : memref<14x1xf32, #tpu.memory_space<vmem>>, vector<14x1xf32>
    %26 = vector.broadcast %25 : vector<14x1xf32> to vector<14x256xf32>
    %27 = arith.addf %24, %26 : vector<14x256xf32>
    %28 = arith.truncf %27 : vector<14x256xf32> to vector<14x256xbf16>
    %c0_20 = arith.constant 0 : index
    %c0_21 = arith.constant 0 : index
    %c0_22 = arith.constant 0 : index
    %29 = vector.load %arg10[%c0_20, %c0_21, %c0_22] : memref<1x14x256xbf16, #tpu.memory_space<vmem>>, vector<1x14x256xbf16>
    %30 = vector.shape_cast %29 : vector<1x14x256xbf16> to vector<14x256xbf16>
    %31 = vector.shape_cast %28 : vector<14x256xbf16> to vector<1x14x256xbf16>
    tpu.vector_store %arg10[%c0_20, %c0_21, %c0_22], %31 {strides = array<i32>} : memref<1x14x256xbf16, #tpu.memory_space<vmem>>, vector<1x14x256xbf16>,
    return
  }
  func.func @transform_0(%arg0: i32, %arg1: i32) -> (i32, i32, i32) {
    %c0_i32 = arith.constant 0 : i32
    %c0_i32_0 = arith.constant 0 : i32
    return %arg0, %c0_i32, %arg1 : i32, i32, i32
  }
  func.func @transform_1(%arg0: i32, %arg1: i32) -> (i32, i32, i32) {
    %c0_i32 = arith.constant 0 : i32
    %c0_i32_0 = arith.constant 0 : i32
    return %arg0, %c0_i32, %arg1 : i32, i32, i32
  }
  func.func @transform_2(%arg0: i32, %arg1: i32) -> (i32, i32) {
    %c0_i32 = arith.constant 0 : i32
    %c0_i32_0 = arith.constant 0 : i32
    %c0_i32_1 = arith.constant 0 : i32
    return %c0_i32, %c0_i32_0 : i32, i32
  }
  func.func @transform_3(%arg0: i32, %arg1: i32) -> (i32, i32) {
    %c0_i32 = arith.constant 0 : i32
    %c0_i32_0 = arith.constant 0 : i32
    %c0_i32_1 = arith.constant 0 : i32
    return %c0_i32, %c0_i32_0 : i32, i32
  }
  func.func @transform_4(%arg0: i32, %arg1: i32) -> (i32, i32) {
    %c0_i32 = arith.constant 0 : i32
    %c0_i32_0 = arith.constant 0 : i32
    %c0_i32_1 = arith.constant 0 : i32
    return %c0_i32, %c0_i32_0 : i32, i32
  }
  func.func @transform_5(%arg0: i32, %arg1: i32) -> (i32, i32) {
    %c0_i32 = arith.constant 0 : i32
    %c0_i32_0 = arith.constant 0 : i32
    %c0_i32_1 = arith.constant 0 : i32
    return %c0_i32, %c0_i32_0 : i32, i32
  }
  func.func @transform_6(%arg0: i32, %arg1: i32) -> (i32, i32) {
    %c0_i32 = arith.constant 0 : i32
    %c0_i32_0 = arith.constant 0 : i32
    %c0_i32_1 = arith.constant 0 : i32
    return %c0_i32, %c0_i32_0 : i32, i32
  }
  func.func @transform_7(%arg0: i32, %arg1: i32) -> (i32, i32) {
    %c0_i32 = arith.constant 0 : i32
    %c0_i32_0 = arith.constant 0 : i32
    %c0_i32_1 = arith.constant 0 : i32
    return %c0_i32, %c0_i32_0 : i32, i32
  }
  func.func @transform_8(%arg0: i32, %arg1: i32) -> (i32, i32, i32) {
    %c0_i32 = arith.constant 0 : i32
    %c0_i32_0 = arith.constant 0 : i32
    return %arg0, %c0_i32, %arg1 : i32, i32, i32
  }
}

</mosaic_0001>

<bundles_post_ra>
// kernel: xnet_forward.1
= control target key start
LH: loop header
LB: loop body
LE: loop exit
PB: predicated region body
PF: predicated region fallthrough
CT: control target
= control target key end

     0   :  { %s1063_s27 = smov 0   ;;  %s1065_s28 = smov 0   ;;  %s1229_s0 = inlined_call_operand.vmem [shape: f32[2,1,256], index: 0, kind: input, shape index: {}]   ;;  %s1230_s1 = inlined_call_operand.vmem [shape: f32[2,14,256], index: 1, kind: input, shape index: {}]   ;;  %s1231_s2 = inlined_call_operand.vmem [shape: f32[64,1], index: 2, kind: input, shape index: {}]   ;;  %s1232_s3 = inlined_call_operand.vmem [shape: f32[64,1], index: 3, kind: input, shape index: {}]   ;;  %s1233_s4 = inlined_call_operand.vmem [shape: bf16[64,14], index: 4, kind: input, shape index: {}]   ;;  %s1234_s5 = inlined_call_operand.vmem [shape: f32[64,1], index: 5, kind: input, shape index: {}]   ;;  %s1235_s6 = inlined_call_operand.vmem [shape: bf16[14,64], index: 6, kind: input, shape index: {}]   ;;  %s1236_s7 = inlined_call_operand.vmem [shape: f32[14,1], index: 7, kind: input, shape index: {}]   ;;  %s1237_s8 = inlined_call_operand.vmem [shape: bf16[2,14,256], index: 8, kind: output, shape index: {}]  }
   0x1   :  { %s1067_s29 = smov 0  }
   0x2 LB: > { %s30_s30 = sadd.s32 1, %s1011_s28  ;;  %p936_p0 = scmp.ge.s32.totalorder %s1015_s29, 1  ;;  %s1015_s29 = sphi %s1067_s29, %s18_s29   ;;  %s1011_s28 = sphi %s1065_s28, %s1239_s28   ;;  %s1007_s27 = sphi %s1063_s27, %s1238_s27  }
   0x3   : > { %p32_p1 = scmp.ge.s32.totalorder %s30_s30, 2  ;;  %p299_p2 = scmp.lt.s32.totalorder %s1015_s29, 3 }
   0x5   : > { %s1241_s30 = smov (%p32_p1, %s30_s30), 0  ;;  %p300_p3 = pnand %p936_p0, %p299_p2 }
   0x6   : > { %p350_p4 = scmp.lt.s32.totalorder (!%p300_p3), %s1007_s27, 1  ;;  %v1017_v0 = vmov (!%p300_p3), 0   ;;  %v455_v1 = vld [vmem:[%s1232_s3] sm:$0xff] (!%p300_p3)  ;;  %v456_v3 = vld [vmem:[%s1232_s3 + $0x8] sm:$0xff] (!%p300_p3)  ;;  %vm630_vm0 = vcmask (!%p300_p3), 1046528   ;;  %vm617_vm1 = vcmask (!%p300_p3), 113664   ;;  %v429_v46 = vlaneseq (!%p300_p3) }
   0x7   : > { %303 = sbr.rel (%p300_p3) target bundleno = 496 (0x1f0), region = 52  ;;  %669 = vmatprep.mubr.bf16.mxu0 (!%p300_p3), %v1017_v0  ;;  %987 = vset.pattern.permute.xlu1 (!%p300_p3), %v1017_v0  ;;  %v380_v2 = vld [vmem:[%s1231_s2] sm:$0xff] (!%p300_p3)  ;;  %v381_v6 = vld [vmem:[%s1231_s2 + $0x8] sm:$0xff] (!%p300_p3)  ;;  %v383_v15 = vld [vmem:[%s1231_s2 + $0x18] sm:$0xff] (!%p300_p3)  ;;  %vm769_vm2 = vcmask (!%p300_p3), 523264  }
   0x8   : > { %986 = vset.pattern.permute.xlu0 (!%p300_p3), %v1017_v0  ;;  %805 = vmatprep.mubr.bf16.mxu1 (!%p300_p3), %v1017_v0  ;;  %v550_v11 = vld [vmem:[%s1234_s5 + $0x8] sm:$0xff] (!%p300_p3)  ;;  %v988_v13 = vld [vmem:[%s1233_s4] sm:$0xff] (!%p300_p3)   ;;  %v382_v16 = vld [vmem:[%s1231_s2 + $0x10] sm:$0xff] (!%p300_p3)  ;;  %v430_v48 = vshrl.u32 (!%p300_p3), %v429_v46, 7 }
   0x9   : > { %465 = vperm.xlu1 (!%p300_p3), %987, %v455_v1   ;;  %390 = vperm.xlu0 (!%p300_p3), %986, %v380_v2   ;;  %v549_v14 = vld [vmem:[%s1234_s5] sm:$0xff] (!%p300_p3)  ;;  %v458_v17 = vld [vmem:[%s1232_s3 + $0x18] sm:$0xff] (!%p300_p3)  ;;  %v989_v18 = vld [vmem:[%s1233_s4 + $0x8] sm:$0xff] (!%p300_p3)  }
   0xa   : > { %v457_v19 = vld [vmem:[%s1232_s3 + $0x10] sm:$0xff] (!%p300_p3)  ;;  %v552_v20 = vld [vmem:[%s1234_s5 + $0x18] sm:$0xff] (!%p300_p3)  ;;  %v385_v22 = vld [vmem:[%s1231_s2 + $0x28] sm:$0xff] (!%p300_p3)  ;;  %v431_v50 = vsub.s32 (!%p300_p3), 0, %v430_v48  ;;  %v435_v51 = vsub.s32 (!%p300_p3), 1, %v430_v48 }
   0xb   : > { %v551_v21 = vld [vmem:[%s1234_s5 + $0x10] sm:$0xff] (!%p300_p3)  ;;  %v384_v24 = vld [vmem:[%s1231_s2 + $0x20] sm:$0xff] (!%p300_p3)  ;;  %v460_v25 = vld [vmem:[%s1232_s3 + $0x28] sm:$0xff] (!%p300_p3) }
   0xc   : > { %v990_v23 = vld [vmem:[%s1233_s4 + $0x10] sm:$0xff] (!%p300_p3)   ;;  %v459_v26 = vld [vmem:[%s1232_s3 + $0x20] sm:$0xff] (!%p300_p3)  ;;  %v554_v27 = vld [vmem:[%s1234_s5 + $0x28] sm:$0xff] (!%p300_p3) }
   0xd   : > { %470 = vperm.xlu1 (!%p300_p3), %987, %v456_v3   ;;  %395 = vperm.xlu0 (!%p300_p3), %986, %v381_v6   ;;  %v991_v28 = vld [vmem:[%s1233_s4 + $0x18] sm:$0xff] (!%p300_p3)   ;;  %v553_v29 = vld [vmem:[%s1234_s5 + $0x20] sm:$0xff] (!%p300_p3)  ;;  %v386_v31 = vld [vmem:[%s1231_s2 + $0x30] sm:$0xff] (!%p300_p3) }
   0xe   : > { %s1243_s27 = smov (!%p350_p4, %s1007_s27), 1  ;;  %v387_v30 = vld [vmem:[%s1231_s2 + $0x38] sm:$0xff]  ;;  %v461_v33 = vld [vmem:[%s1232_s3 + $0x30] sm:$0xff]  ;;  %v753_v36 = vld [vmem:[%s1236_s7 + $0x8] sm:$0x3f] }
   0xf   : > { %s957_s11 = sshll.u32 %s1243_s27, 5  ;;  %v462_v32 = vld [vmem:[%s1232_s3 + $0x38] sm:$0xff]  ;;  %v555_v35 = vld [vmem:[%s1234_s5 + $0x30] sm:$0xff]  ;;  %v752_v37 = vld [vmem:[%s1236_s7] sm:$0xff]  ;;  %s937_s19 = sshll.u32 %s1243_s27, 1 }
  0x10   : > { %s366_s16 = scalar_lea.vmem %s1230_s1, %s957_s11  ;;  %v556_v34 = vld [vmem:[%s1234_s5 + $0x38] sm:$0xff]  ;;  %s356_s22 = scalar_lea.vmem %s1229_s0, %s937_s19 }
  0x11   : > { %v536_v4 = vld [vmem:[%s366_s16 + $0x8] sm:$0xff]  ;;  %v538_v5 = vld [vmem:[%s366_s16 + $0x18] sm:$0x3f]  ;;  %v535_v8 = vld [vmem:[%s366_s16] sm:$0xff]  ;;  %564 = vperm.xlu1 %987, %v550_v11   ;;  %559 = vperm.xlu0 %986, %v549_v14   ;;  %s958_s25 = sshll.u32 %s1243_s27, 4 }
  0x12   : > { %v540_v7 = vpack.c.bf16 %v538_v5, %v536_v4  ;;  %v537_v9 = vld [vmem:[%s366_s16 + $0x10] sm:$0x3f]  ;;  %v379_v53 = vld [vmem:[%s356_s22] sm:$0x3]  ;;  %s376_s10 = scalar_lea.vmem %s1237_s8, %s958_s25 }
  0x13   : > { %v539_v10 = vpack.c.bf16 %v537_v9, %v535_v8  ;;  %v1185_v55 = vrot.slane %v379_v53, %v431_v50  ;;  %v1187_v56 = vrot.slane %v379_v53, %v435_v51 }
  0x14   : > { %946 = vmatprep.subr.msk.bf16.mxu0 %vm630_vm0, %v540_v7 }
  0x15   : > { %v632_v12 = vsel %vm630_vm0, %v539_v10, 0  ;;  %405 = vperm.xlu1 %987, %v383_v15   ;;  %400 = vperm.xlu0 %986, %v382_v16  }
  0x16   : > { %638 = vmatpush1.bf16.msra.mxu0 %v632_v12 }
  0x19   : > { %947 = vmatmul.mubr.msk.bf16.vlgmr.msra.gmra.mrb[0].mxu0 %vm617_vm1, %v988_v13  ;;  %480 = vperm.xlu1 %987, %v458_v17  }
  0x1a   : > { %679 = vmatprep.mubr.bf16.mxu0 %v1017_v0  ;;  %475 = vperm.xlu0 %986, %v457_v19  }
  0x1d   : > { %574 = vperm.xlu1 %987, %v552_v20  }
  0x1e   : > { %569 = vperm.xlu0 %986, %v551_v21  }
  0x21   : > { %948 = vmatmul.mubr.msk.bf16.gmra.mrb[4].mxu0 %vm617_vm1, %v989_v18  ;;  %415 = vperm.xlu1 %987, %v385_v22  }
  0x22   : > { %689 = vmatprep.mubr.bf16.mxu0 %v1017_v0  ;;  %410 = vperm.xlu0 %986, %v384_v24  }
  0x25   : > { %490 = vperm.xlu1 %987, %v460_v25  }
  0x26   : > { %485 = vperm.xlu0 %986, %v459_v26  }
  0x29   : > { %949 = vmatmul.mubr.msk.bf16.gmra.mrb[8].mxu0 %vm617_vm1, %v990_v23  ;;  %584 = vperm.xlu1 %987, %v554_v27  }
  0x2a   : > { %699 = vmatprep.mubr.bf16.mxu0 %v1017_v0  ;;  %579 = vperm.xlu0 %986, %v553_v29  }
  0x2d   : > { %425 = vperm.xlu1 %987, %v387_v30  }
  0x2e   : > { %420 = vperm.xlu0 %986, %v386_v31  }
  0x31   : > { %950 = vmatmul.mubr.msk.bf16.gmra.mrb[12].mxu0 %vm617_vm1, %v991_v28  ;;  %500 = vperm.xlu1 %987, %v462_v32  }
  0x32   : > { %495 = vperm.xlu0 %986, %v461_v33  }
  0x35   : > { %594 = vperm.xlu1 %987, %v556_v34  }
  0x36   : > { %589 = vperm.xlu0 %986, %v555_v35  }
  0x39   : > { %761 = vperm.xlu1 %987, %v753_v36  }
  0x3a   : > { %756 = vperm.xlu0 %986, %v752_v37  }
  0x88   : > { %v391_v38 = vpop.permute.xlu0 %390  ;;  %v466_v39 = vpop.permute.xlu1 %465 }
  0x89   : > { %v439_v58 = vmul.f32 %v1185_v55, %v391_v38  ;;  %v440_v59 = vmul.f32 %v1187_v56, %v391_v38 }
  0x8b   : > { %v503_v63 = vadd.f32 %v466_v39, %v439_v58  ;;  %v504_v0 = vadd.f32 %v466_v39, %v440_v59 }
  0x8c   : > { %v396_v40 = vpop.permute.xlu0 %395  ;;  %v471_v41 = vpop.permute.xlu1 %470 }
  0x8d   : > { %v441_v61 = vmul.f32 %v1185_v55, %v396_v40  ;;  %v442_v62 = vmul.f32 %v1187_v56, %v396_v40  ;;  %v519_v13 = vmax.f32 %v503_v63, 0.0  ;;  %v520_v16 = vmax.f32 %v504_v0, 0.0 }
  0x8f   : > { %v505_v3 = vadd.f32 %v471_v41, %v441_v61  ;;  %v506_v6 = vadd.f32 %v471_v41, %v442_v62 }
  0x90   : > { %v560_v42 = vpop.permute.xlu0 %559  ;;  %v565_v43 = vpop.permute.xlu1 %564 }
  0x91   : > { %v521_v17 = vmax.f32 %v505_v3, 0.0  ;;  %v522_v25 = vmax.f32 %v506_v6, 0.0 }
  0x94   : > { %v401_v44 = vpop.permute.xlu0 %400  ;;  %v406_v45 = vpop.permute.xlu1 %405 }
  0x95   : > { %v445_v18 = vmul.f32 %v1185_v55, %v406_v45  ;;  %v443_v19 = vmul.f32 %v1185_v55, %v401_v44  ;;  %v446_v21 = vmul.f32 %v1187_v56, %v406_v45  ;;  %v444_v22 = vmul.f32 %v1187_v56, %v401_v44 }
  0x98   : > { %v481_v49 = vpop.permute.xlu1 %480 }
  0x99   : > { %v476_v47 = vpop.permute.xlu0 %475  ;;  %v509_v32 = vadd.f32 %v481_v49, %v445_v18  ;;  %v510_v37 = vadd.f32 %v481_v49, %v446_v21 }
  0x9a   : > { %v507_v33 = vadd.f32 %v476_v47, %v443_v19  ;;  %v508_v38 = vadd.f32 %v476_v47, %v444_v22 }
  0x9b   : > { %v525_v53 = vmax.f32 %v509_v32, 0.0 }
  0x9c   : > { %v575_v54 = vpop.permute.xlu1 %574  ;;  %v523_v58 = vmax.f32 %v507_v33, 0.0  ;;  %v524_v59 = vmax.f32 %v508_v38, 0.0 }
  0x9d   : > { %v570_v52 = vpop.permute.xlu0 %569 }
  0xa0   : > { %v416_v60 = vpop.permute.xlu1 %415 }
  0xa1   : > { %v1189_v57 = vpop.permute.xlu0 %410  ;;  %v449_v45 = vmul.f32 %v1185_v55, %v416_v60  ;;  %v450_v46 = vmul.f32 %v1187_v56, %v416_v60 }
  0xa2   : > { %v447_v49 = vmul.f32 %v1185_v55, %v1189_v57  ;;  %v448_v61 = vmul.f32 %v1187_v56, %v1189_v57 }
  0xa4   : > { %v491_v7 = vpop.permute.xlu1 %490 }
  0xa5   : > { %v1195_v1 = vpop.permute.xlu0 %485  ;;  %v514_v3 = vadd.f32 %v491_v7, %v450_v46 }
  0xa6   : > { %v511_v6 = vadd.f32 %v1195_v1, %v447_v49 }
  0xa7   : > { %v530_v19 = vmax.f32 %v514_v3, 0.0 }
  0xa8   : > { %v585_v28 = vpop.permute.xlu1 %584  ;;  %v527_v22 = vmax.f32 %v511_v6, 0.0 }
  0xa9   : > { %v580_v23 = vpop.permute.xlu0 %579 }
  0xac   : > { %v426_v62 = vpop.permute.xlu1 %425 }
  0xad   : > { %v421_v48 = vpop.permute.xlu0 %420 }
  0xec   : > { %v671_v2 = vpop.f32.mrb[0].mxu0 }
  0xed   : > { %v672_v4 = vadd.f32 %v671_v2, %v560_v42  ;;  %v673_v5 = vpop.f32.mrb[1].mxu0  ;;  %v513_v2 = vadd.f32 %v491_v7, %v449_v45  ;;  %v501_v7 = vpop.permute.xlu1 %500 }
  0xee   : > { %v674_v8 = vadd.f32 %v673_v5, %v560_v42  ;;  %v675_v9 = vpop.f32.mrb[2].mxu0 }
  0xef   : > { %v710_v10 = vmax.f32 %v672_v4, 0.0  ;;  %v676_v11 = vadd.f32 %v675_v9, %v565_v43  ;;  %v677_v12 = vpop.f32.mrb[3].mxu0  ;;  %v529_v18 = vmax.f32 %v513_v2, 0.0  ;;  %v992_v2 = vld [vmem:[%s1235_s6] sm:$0x7f]  }
  0xf0   : > { %v711_v14 = vmax.f32 %v674_v8, 0.0  ;;  %v678_v15 = vadd.f32 %v677_v12, %v565_v43  ;;  %v496_v12 = vpop.permute.xlu0 %495 }
  0xf1   : > { %v712_v20 = vmax.f32 %v676_v11, 0.0  ;;  %v726_v26 = vmul.f32 %v710_v10, %v519_v13  ;;  %v512_v11 = vadd.f32 %v1195_v1, %v448_v61 }
  0xf2   : > { %v713_v24 = vmax.f32 %v678_v15, 0.0  ;;  %v727_v30 = vmul.f32 %v711_v14, %v520_v16 }
  0xf3   : > { %v728_v27 = vmul.f32 %v712_v20, %v521_v17  ;;  %v528_v1 = vmax.f32 %v512_v11, 0.0 }
  0xf4   : > { %v681_v29 = vpop.f32.mrb[4].mxu0  ;;  %v729_v31 = vmul.f32 %v713_v24, %v522_v25  ;;  %v453_v24 = vmul.f32 %v1185_v55, %v426_v62  ;;  %v451_v25 = vmul.f32 %v1185_v55, %v421_v48  ;;  %v590_v32 = vpop.permute.xlu0 %589 }
  0xf5   : > { %v682_v34 = vadd.f32 %v681_v29, %v570_v52  ;;  %v683_v35 = vpop.f32.mrb[5].mxu0  ;;  %v742_v36 = vpack.c.bf16 %v728_v27, %v726_v26  ;;  %v452_v27 = vmul.f32 %v1187_v56, %v421_v48 }
  0xf6   : > { %v684_v39 = vadd.f32 %v683_v35, %v570_v52  ;;  %v685_v40 = vpop.f32.mrb[6].mxu0  ;;  %v743_v41 = vpack.c.bf16 %v729_v31, %v727_v30  ;;  %v526_v52 = vmax.f32 %v510_v37, 0.0  ;;  %v517_v35 = vadd.f32 %v501_v7, %v453_v24 }
  0xf7   : > { %v714_v42 = vmax.f32 %v682_v34, 0.0  ;;  %v686_v43 = vadd.f32 %v685_v40, %v575_v54  ;;  %v687_v44 = vpop.f32.mrb[7].mxu0  ;;  %v516_v40 = vadd.f32 %v496_v12, %v452_v27 }
  0xf8   : > { %v715_v50 = vmax.f32 %v684_v39, 0.0  ;;  %v688_v51 = vadd.f32 %v687_v44, %v575_v54  ;;  %773 = vmatprep.subr.bf16.mxu1 %v743_v41  ;;  %v595_v41 = vpop.permute.xlu1 %594  ;;  %v757_v3 = vpop.permute.xlu0 %756 }
  0xf9   : > { %v716_v47 = vmax.f32 %v686_v43, 0.0  ;;  %774 = vmatpush1.bf16.msra.mxu1 %v742_v36  ;;  %v730_v0 = vmul.f32 %v714_v42, %v523_v58  ;;  %v515_v36 = vadd.f32 %v496_v12, %v451_v25 }
  0xfa   : > { %v717_v63 = vmax.f32 %v688_v51, 0.0  ;;  %v731_v54 = vmul.f32 %v715_v50, %v524_v59  ;;  %v533_v51 = vmax.f32 %v517_v35, 0.0 }
  0xfb   : > { %v732_v60 = vmul.f32 %v716_v47, %v525_v53  ;;  %v531_v53 = vmax.f32 %v515_v36, 0.0  ;;  %v532_v47 = vmax.f32 %v516_v40, 0.0 }
  0xfc   : > { %v733_v4 = vmul.f32 %v717_v63, %v526_v52  ;;  %v691_v5 = vpop.f32.mrb[8].mxu0  ;;  %v762_v6 = vpop.permute.xlu1 %761 }
  0xfd   : > { %v692_v8 = vadd.f32 %v691_v5, %v580_v23  ;;  %v693_v9 = vpop.f32.mrb[9].mxu0  ;;  %v744_v10 = vpack.c.bf16 %v732_v60, %v730_v0 }
  0xfe   : > { %v694_v13 = vadd.f32 %v693_v9, %v580_v23  ;;  %v695_v14 = vpop.f32.mrb[10].mxu0  ;;  %v745_v57 = vpack.c.bf16 %v733_v4, %v731_v54  ;;  %v454_v23 = vmul.f32 %v1187_v56, %v426_v62 }
  0xff   : > { %v718_v15 = vmax.f32 %v692_v8, 0.0  ;;  %v696_v16 = vadd.f32 %v695_v14, %v585_v28  ;;  %v697_v17 = vpop.f32.mrb[11].mxu0 }
 0x100   : > { %v719_v20 = vmax.f32 %v694_v13, 0.0  ;;  %v698_v21 = vadd.f32 %v697_v17, %v585_v28  ;;  %775 = vmatprep.subr.bf16.mxu1 %v745_v57  ;;  %v518_v55 = vadd.f32 %v501_v7, %v454_v23 }
 0x101   : > { %v720_v26 = vmax.f32 %v696_v16, 0.0  ;;  %776 = vmatpush1.bf16.msra.mxu1 %v744_v10  ;;  %v734_v30 = vmul.f32 %v718_v15, %v527_v22 }
 0x102   : > { %v721_v29 = vmax.f32 %v698_v21, 0.0  ;;  %v735_v33 = vmul.f32 %v719_v20, %v528_v1  ;;  %v534_v49 = vmax.f32 %v518_v55, 0.0 }
 0x103   : > { %v736_v31 = vmul.f32 %v720_v26, %v529_v18 }
 0x104   : > { %v737_v34 = vmul.f32 %v721_v29, %v530_v19  ;;  %v701_v28 = vpop.f32.mrb[12].mxu0 }
 0x105   : > { %v702_v37 = vadd.f32 %v701_v28, %v590_v32  ;;  %v703_v38 = vpop.f32.mrb[13].mxu0  ;;  %v746_v39 = vpack.c.bf16 %v736_v31, %v734_v30 }
 0x106   : > { %v704_v42 = vadd.f32 %v703_v38, %v590_v32  ;;  %v705_v43 = vpop.f32.mrb[14].mxu0  ;;  %v747_v44 = vpack.c.bf16 %v737_v34, %v735_v33 }
 0x107   : > { %v722_v45 = vmax.f32 %v702_v37, 0.0  ;;  %v706_v56 = vadd.f32 %v705_v43, %v595_v41  ;;  %v707_v46 = vpop.f32.mrb[15].mxu0 }
 0x108   : > { %v723_v48 = vmax.f32 %v704_v42, 0.0  ;;  %v708_v50 = vadd.f32 %v707_v46, %v595_v41  ;;  %777 = vmatprep.subr.bf16.mxu1 %v747_v44 }
 0x109   : > { %v724_v58 = vmax.f32 %v706_v56, 0.0  ;;  %778 = vmatpush1.bf16.msra.mxu1 %v746_v39  ;;  %v738_v59 = vmul.f32 %v722_v45, %v531_v53 }
 0x10a   : > { %v725_v52 = vmax.f32 %v708_v50, 0.0  ;;  %v739_v62 = vmul.f32 %v723_v48, %v532_v47 }
 0x10b   : > { %v740_v61 = vmul.f32 %v724_v58, %v533_v51 }
 0x10c   : > { %v741_v63 = vmul.f32 %v725_v52, %v534_v49 }
 0x10d   : > { %v748_v0 = vpack.c.bf16 %v740_v61, %v738_v59 }
 0x10e   : > { %v749_v60 = vpack.c.bf16 %v741_v63, %v739_v62 }
 0x110   : > { %779 = vmatprep.subr.bf16.mxu1 %v749_v60 }
 0x111   : > { %780 = vmatpush1.bf16.msra.mxu1 %v748_v0 }
 0x114   : > { %952 = vmatmul.mubr.msk.bf16.vlgmr.msra.gmra.mrb[0].mxu1 %vm769_vm2, %v992_v2 }
 0x1e7   : > { %v807_v54 = vpop.f32.mrb[0].mxu1 }
 0x1e8   : > { %v808_v4 = vadd.f32 %v807_v54, %v757_v3  ;;  %v809_v5 = vpop.f32.mrb[1].mxu1 }
 0x1e9   : > { %v810_v8 = vadd.f32 %v809_v5, %v757_v3  ;;  %v811_v9 = vpop.f32.mrb[2].mxu1 }
 0x1ea   : > { %v812_v10 = vadd.f32 %v811_v9, %v762_v6  ;;  %v813_v11 = vpop.f32.mrb[3].mxu1 }
 0x1eb   : > { %v959_v12 = vpack.c.bf16 %v810_v8, %v808_v4  ;;  %v814_v13 = vadd.f32 %v813_v11, %v762_v6 }
 0x1ed   : > { %828 = vst [vmem:[%s376_s10] sm:$0xff] %v959_v12  ;;  %v960_v14 = vpack.c.bf16 %v814_v13, %v812_v10 }
 0x1ef   : > { %829 = vst [vmem:[%s376_s10 + $0x8] sm:$0x77] %v960_v14 }
 0x1f0 PF: > { %s18_s29 = sadd.s32 1, %s1015_s29   ;;  %s1238_s27 = smov %s1011_s28 }
 0x1f1   : > { %p15_p5 = scmp.ge.s32.totalorder %s18_s29, 4   ;;  %s1239_s28 = smov %s1241_s30 }
 0x1f3   :  { %17 = sbr.rel (!%p15_p5) target bundleno = 2 (0x2), region = 85 }

</bundles_post_ra>
